<compile_context>
chip_gen: v6e
topology: v6e:2x2x1
jax: 0.10.0
libtpu: 0.0.40
codegen_flags: <defaults>
</compile_context>

<pallas_src>
import functools

import numpy as np
import jax
import jax.numpy as jnp
from jax.experimental import pallas as pl
from jax.experimental.pallas import tpu as pltpu

NUM_CLASSES = 8   # NUM_CLASSES global from the training script (synthetic value)

# Scaled-down stand-ins for MODEL_CONFIGS feature dims (2560 / 1920) so the
# demo stays small; the kernel is generic over feature_dim.
FEATURE_DIM = 256
SPATIAL = 4        # backbone output spatial size (H = W = 4)
BATCH = 2

_LANE = 128
_SUBLANE = 8


# --------------------------------------------------------------------------- #
# Kernel
# --------------------------------------------------------------------------- #
def _head_kernel(feats_ref, w_ref, b_ref, out_ref, pooled_ref, *,
                 apply_relu, inv_hw):
    """One (batch-tile, spatial-tile) step of:
       logits = mean_{hw}(relu?(feats)) @ W^T + b."""
    h = pl.program_id(1)

    @pl.when(h == 0)
    def _init():
        pooled_ref[...] = jnp.zeros_like(pooled_ref)

    f = feats_ref[...]                                  # (tb, t_hw, C), input dtype
    if apply_relu:                                      # densenet: ReLU before pool
        f = jnp.maximum(f, jnp.zeros((), dtype=f.dtype))
    # Spatial partial sum with f32 accumulation; the widening is folded into
    # the reduction instead of materializing a full-tile f32 temporary.
    pooled_ref[...] += jnp.sum(f, axis=1, dtype=jnp.float32)    # (tb, C) f32

    @pl.when(h == pl.num_programs(1) - 1)
    def _finalize():
        pooled = pooled_ref[...] * inv_hw               # 1/(H*W) applied once
        logits = jnp.dot(pooled, w_ref[...].astype(jnp.float32),
                         preferred_element_type=jnp.float32)    # (tb, NC)
        logits = logits + b_ref[...].astype(jnp.float32)
        out_ref[...] = jnp.expand_dims(logits, 1).astype(out_ref.dtype)


# --------------------------------------------------------------------------- #
# Tile / VMEM sizing
# --------------------------------------------------------------------------- #
def _vmem_capacity_bytes():
    try:
        return int(pltpu.get_tpu_info().vmem_capacity_bytes)
    except Exception:
        return 64 << 20   # assume the smallest (v7x per-TC) VMEM if unqueryable


def _step_bytes(tb, t_hw, C, feat_itemsize):
    streamed = 2 * tb * t_hw * C * feat_itemsize   # double-buffered feats DMA
    widened = tb * t_hw * C * 4                    # f32 reduction temporary (worst case)
    pooled = tb * C * 4                            # pooled accumulator scratch
    return streamed + widened + pooled


def _fixed_bytes(C, NC, B):
    nc_pad = ((NC + _LANE - 1) // _LANE) * _LANE
    c_pad = ((C + _SUBLANE - 1) // _SUBLANE) * _SUBLANE
    w = 2 * c_pad * nc_pad * 4                     # resident W^T (lane padded)
    b = 2 * _SUBLANE * nc_pad * 4
    o = 2 * max(B, _SUBLANE) * nc_pad * 4
    return w + b + o


def _divisors(n):
    return [d for d in range(1, n + 1) if n % d == 0]


def _pick_tiles(B, HW, C, feat_itemsize, budget):
    """Pick (tb, t_hw): full-C blocks, largest contiguous spatial slab that
    fits, and >= 2 batch grid steps whenever possible (v7x dual TensorCore)."""
    hw_cands = sorted([d for d in _divisors(HW) if d == HW or d % _SUBLANE == 0],
                      reverse=True)
    b_cands = sorted(_divisors(B), reverse=True)
    for t_hw in hw_cands:                          # prefer full-HW (biggest DMA runs)
        fitting = [tb for tb in b_cands
                   if _step_bytes(tb, t_hw, C, feat_itemsize) <= budget]
        if not fitting:
            continue
        multi = [tb for tb in fitting if B // tb >= 2]
        tb = max(multi) if (multi and B >= 2) else max(fitting)
        return tb, t_hw
    return 1, min(hw_cands)                        # smallest legal tile fallback


# --------------------------------------------------------------------------- #
# Wrapper
# --------------------------------------------------------------------------- #
def classifier_head(feats_bhwc, weight, bias, *, apply_relu=False,
                    tb=None, t_hw=None):
    """Pallas head: global-avg-pool + Linear, matching torchvision semantics.

    feats_bhwc: (B, H*W, C) backbone feature map, channels-last (keep the
                backbone's output dtype, e.g. bf16 — accumulation is f32)
    weight:     (num_classes, C)   -- nn.Linear weight layout
    bias:       (num_classes,)
    returns:    (B, num_classes) logits, f32
    """
    B, HW, C = feats_bhwc.shape
    NC = weight.shape[0]
    assert weight.shape == (NC, C) and bias.shape == (NC,)

    feat_itemsize = jnp.dtype(feats_bhwc.dtype).itemsize
    cap = _vmem_capacity_bytes()
    usable = min(int(0.75 * cap), cap - (8 << 20))          # ~48 MiB v7x, ~96 MiB v5e/v6e
    budget = max(usable - _fixed_bytes(C, NC, B) - (4 << 20), 1 << 20)

    auto_tb, auto_hw = _pick_tiles(B, HW, C, feat_itemsize, budget)
    tb = auto_tb if tb is None else tb
    t_hw = auto_hw if t_hw is None else t_hw
    assert B % tb == 0 and HW % t_hw == 0

    w_t = jnp.transpose(weight, (1, 0))                     # (C, NC): classes on lanes
    b2 = bias.reshape(1, NC)

    total = (_step_bytes(tb, t_hw, C, feat_itemsize) + _fixed_bytes(C, NC, tb)
             + (8 << 20))
    vmem_bytes = int(min(max(total, 32 << 20), usable))

    cost = pl.CostEstimate(
        flops=B * HW * C + 2 * B * C * NC,
        transcendentals=0,
        bytes_accessed=B * HW * C * feat_itemsize + C * NC * 4 + NC * 4 + B * NC * 4)

    kernel = functools.partial(_head_kernel, apply_relu=apply_relu,
                               inv_hw=float(1.0 / HW))
    out = pl.pallas_call(
        kernel,
        out_shape=jax.ShapeDtypeStruct((B, 1, NC), jnp.float32),
        grid_spec=pltpu.PrefetchScalarGridSpec(
            num_scalar_prefetch=0,
            grid=(B // tb, HW // t_hw),     # (parallel batch, spatial reduction)
            in_specs=[
                # Full-C blocks: contiguous HBM runs, default double buffering.
                pl.BlockSpec((tb, t_hw, C), lambda b, h: (b, h, 0)),
                pl.BlockSpec((C, NC), lambda b, h: (0, 0)),    # resident weight
                pl.BlockSpec((1, NC), lambda b, h: (0, 0)),    # resident bias
            ],
            out_specs=pl.BlockSpec((tb, 1, NC), lambda b, h: (b, 0, 0)),
            scratch_shapes=[pltpu.VMEM((tb, C), jnp.float32)],  # pooled accumulator
        ),
        compiler_params=pltpu.CompilerParams(
            dimension_semantics=("parallel", "arbitrary"),
            vmem_limit_bytes=vmem_bytes),
        cost_estimate=cost,
    )(feats_bhwc, w_t, b2)
    return out.reshape(B, NC)


def reference_head(feats_bhwc, weight, bias, apply_relu=False):
    f = feats_bhwc.astype(jnp.float32)
    if apply_relu:
        f = jnp.maximum(f, 0.0)
    pooled = jnp.mean(f, axis=1)                    # (B, C)
    return pooled @ weight.astype(jnp.float32).T + bias.astype(jnp.float32)


if __name__ == "__main__":
    key = jax.random.PRNGKey(0)
    k_feat, k_w, k_b = jax.random.split(key, 3)

    HW = SPATIAL * SPATIAL
    # Backbone feature map already channels-last (B, H*W, C); no NCHW->NHWC
    # transpose is materialized right before the kernel.
    feats = jax.random.normal(
        k_feat, (BATCH, HW, FEATURE_DIM), dtype=jnp.float32)
    weight = jax.random.normal(
        k_w, (NUM_CLASSES, FEATURE_DIM), dtype=jnp.float32) * 0.02
    bias = jax.random.normal(k_b, (NUM_CLASSES,), dtype=jnp.float32) * 0.02

    # 'efficientnet' head: avgpool -> flatten -> Linear (no ReLU), auto tiles
    # (full-HW blocks, >=2 batch grid steps).
    logits = jax.block_until_ready(
        classifier_head(feats, weight, bias, apply_relu=False))
    np.testing.assert_allclose(
        np.asarray(logits),
        np.asarray(reference_head(feats, weight, bias, apply_relu=False)),
        rtol=1e-5, atol=1e-5)

    # 'densenet' head: ReLU before the pool; force t_hw=8 to exercise the
    # multi-step spatial reduction (init / accumulate / finalize path).
    logits_dn = jax.block_until_ready(
        classifier_head(feats, weight, bias, apply_relu=True, t_hw=8))
    np.testing.assert_allclose(
        np.asarray(logits_dn),
        np.asarray(reference_head(feats, weight, bias, apply_relu=True)),
        rtol=1e-5, atol=1e-5)

    # bf16 streaming path (halves HBM bytes for the dominant input); the
    # reduction still accumulates in f32.
    feats_bf16 = feats.astype(jnp.bfloat16)
    logits_bf = jax.block_until_ready(
        classifier_head(feats_bf16, weight, bias, apply_relu=False))
    np.testing.assert_allclose(
        np.asarray(logits_bf),
        np.asarray(reference_head(feats_bf16, weight, bias, apply_relu=False)),
        rtol=1e-4, atol=1e-4)

    print("KERNEL_OK")
</pallas_src>

<mosaic_0001>
module attributes {stable_mosaic.version = 11 : i64} {
  func.func @_head_kernel(%arg0: i32, %arg1: i32, %arg2: memref<1x16x256xf32, #tpu.memory_space<vmem>>, %arg3: memref<256x8xf32, #tpu.memory_space<vmem>>, %arg4: memref<1x8xf32, #tpu.memory_space<vmem>>, %arg5: memref<1x1x8xf32, #tpu.memory_space<vmem>>, %arg6: memref<1x256xf32, #tpu.memory_space<vmem>>) attributes {dimension_semantics = [#tpu.dimension_semantics<parallel>, #tpu.dimension_semantics<arbitrary>], iteration_bounds = array<i64: 2, 1>, scalar_prefetch = 0 : i64, scratch_operands = 1 : i64, tpu.core_type = #tpu.core_type<tc>, window_params = [{transform_indices = @transform_0, window_bounds = array<i64: 1, 16, 256>}, {pipeline_mode = #tpu.pipeline_mode<synchronous>, transform_indices = @transform_1, window_bounds = array<i64: 256, 8>}, {pipeline_mode = #tpu.pipeline_mode<synchronous>, transform_indices = @transform_2, window_bounds = array<i64: 1, 8>}, {transform_indices = @transform_3, window_bounds = array<i64: 1, 1, 8>}]} {
    %c0_i32 = arith.constant 0 : i32
    %0 = arith.cmpi eq, %arg1, %c0_i32 : i32
    %1 = arith.extui %0 : i1 to i32
    %c0_i32_0 = arith.constant 0 : i32
    %2 = arith.cmpi ne, %1, %c0_i32_0 : i32
    scf.if %2 {
      %cst_9 = arith.constant 0.000000e+00 : f32
      %11 = vector.broadcast %cst_9 : f32 to vector<1x256xf32>
      %c0_10 = arith.constant 0 : index
      %c0_11 = arith.constant 0 : index
      %12 = vector.load %arg6[%c0_10, %c0_11] : memref<1x256xf32, #tpu.memory_space<vmem>>, vector<1x256xf32>
      tpu.vector_store %arg6[%c0_10, %c0_11], %11 {strides = array<i32>} : memref<1x256xf32, #tpu.memory_space<vmem>>, vector<1x256xf32>,
    } else {
    }
    %c0 = arith.constant 0 : index
    %c0_1 = arith.constant 0 : index
    %c0_2 = arith.constant 0 : index
    %3 = vector.load %arg2[%c0, %c0_1, %c0_2] : memref<1x16x256xf32, #tpu.memory_space<vmem>>, vector<1x16x256xf32>
    %c0_3 = arith.constant 0 : index
    %c0_4 = arith.constant 0 : index
    %4 = vector.load %arg6[%c0_3, %c0_4] : memref<1x256xf32, #tpu.memory_space<vmem>>, vector<1x256xf32>
    %cst = arith.constant dense<0.000000e+00> : vector<1x256xf32>
    %5 = vector.multi_reduction <add>, %3, %cst [1] : vector<1x16x256xf32> to vector<1x256xf32>
    %6 = arith.addf %4, %5 : vector<1x256xf32>
    %c0_5 = arith.constant 0 : index
    %c0_6 = arith.constant 0 : index
    %7 = vector.load %arg6[%c0_5, %c0_6] : memref<1x256xf32, #tpu.memory_space<vmem>>, vector<1x256xf32>
    tpu.vector_store %arg6[%c0_5, %c0_6], %6 {strides = array<i32>} : memref<1x256xf32, #tpu.memory_space<vmem>>, vector<1x256xf32>,
    %c0_i32_7 = arith.constant 0 : i32
    %8 = arith.cmpi eq, %arg1, %c0_i32_7 : i32
    %9 = arith.extui %8 : i1 to i32
    %c0_i32_8 = arith.constant 0 : i32
    %10 = arith.cmpi ne, %9, %c0_i32_8 : i32
    scf.if %10 {
      %c0_9 = arith.constant 0 : index
      %c0_10 = arith.constant 0 : index
      %11 = vector.load %arg6[%c0_9, %c0_10] : memref<1x256xf32, #tpu.memory_space<vmem>>, vector<1x256xf32>
      %cst_11 = arith.constant 6.250000e-02 : f32
      %12 = vector.broadcast %cst_11 : f32 to vector<1x256xf32>
      %13 = arith.mulf %11, %12 : vector<1x256xf32>
      %c0_12 = arith.constant 0 : index
      %c0_13 = arith.constant 0 : index
      %14 = vector.load %arg3[%c0_12, %c0_13] : memref<256x8xf32, #tpu.memory_space<vmem>>, vector<256x8xf32>
      %cst_14 = arith.constant dense<0.000000e+00> : vector<1x8xf32>
      %15 = tpu.matmul %13, %14, %cst_14 {dimension_numbers = #tpu.dot_dimension_numbers<[1], [0], [0], [1], [0, 0, 1, 1], [], []>} : vector<1x256xf32>, vector<256x8xf32>, vector<1x8xf32> -> vector<1x8xf32>
      %c0_15 = arith.constant 0 : index
      %c0_16 = arith.constant 0 : index
      %16 = vector.load %arg4[%c0_15, %c0_16] : memref<1x8xf32, #tpu.memory_space<vmem>>, vector<1x8xf32>
      %17 = arith.addf %15, %16 : vector<1x8xf32>
      %18 = vector.shape_cast %17 : vector<1x8xf32> to vector<1x1x8xf32>
      %c0_17 = arith.constant 0 : index
      %c0_18 = arith.constant 0 : index
      %c0_19 = arith.constant 0 : index
      %19 = vector.load %arg5[%c0_17, %c0_18, %c0_19] : memref<1x1x8xf32, #tpu.memory_space<vmem>>, vector<1x1x8xf32>
      tpu.vector_store %arg5[%c0_17, %c0_18, %c0_19], %18 {strides = array<i32>} : memref<1x1x8xf32, #tpu.memory_space<vmem>>, vector<1x1x8xf32>,
    } else {
    }
    return
  }
  func.func @transform_0(%arg0: i32, %arg1: i32) -> (i32, i32, i32) {
    %c0_i32 = arith.constant 0 : i32
    %c0_i32_0 = arith.constant 0 : i32
    return %arg0, %arg1, %c0_i32 : i32, i32, i32
  }
  func.func @transform_1(%arg0: i32, %arg1: i32) -> (i32, i32) {
    %c0_i32 = arith.constant 0 : i32
    %c0_i32_0 = arith.constant 0 : i32
    %c0_i32_1 = arith.constant 0 : i32
    return %c0_i32, %c0_i32_0 : i32, i32
  }
  func.func @transform_2(%arg0: i32, %arg1: i32) -> (i32, i32) {
    %c0_i32 = arith.constant 0 : i32
    %c0_i32_0 = arith.constant 0 : i32
    %c0_i32_1 = arith.constant 0 : i32
    return %c0_i32, %c0_i32_0 : i32, i32
  }
  func.func @transform_3(%arg0: i32, %arg1: i32) -> (i32, i32, i32) {
    %c0_i32 = arith.constant 0 : i32
    %c0_i32_0 = arith.constant 0 : i32
    %c0_i32_1 = arith.constant 0 : i32
    return %arg0, %c0_i32, %c0_i32_0 : i32, i32, i32
  }
}

</mosaic_0001>

<bundles_post_ra>
// kernel: tpu_custom_call.1
= control target key start
LH: loop header
LB: loop body
LE: loop exit
PB: predicated region body
PF: predicated region fallthrough
CT: control target
= control target key end

     0   :  { %8 = vsyncpa [#allocation4], 0  ;;  %s869_s0 = inlined_call_operand.vmem [shape: f32[2,16,256], index: 0, kind: input, shape index: {}]   ;;  %s870_s1 = inlined_call_operand.vmem [shape: f32[256,8], index: 1, kind: input, shape index: {}]   ;;  %s871_s2 = inlined_call_operand.vmem [shape: f32[1,8], index: 2, kind: input, shape index: {}]   ;;  %s872_s3 = inlined_call_operand.hbm [shape: f32[2,1,8], index: 3, kind: output, shape index: {}]  }
   0x1   :  { %10 = vsyncpa [#allocation4 + $0x1], 0  ;;  %s661_s12 = smov 0   ;;  %s663_s13 = smov 0  }
   0x2   :  { %s665_s14 = smov 0   ;;  %s667_s15 = smov 0  }
   0x3   :  { %s669_s16 = smov 0   ;;  %s671_s17 = smov 0  }
   0x4 LB: > { %s457_s18 = sadd.s32 4294967295, %s636_s17   ;;  %s458_s19 = sadd.s32 4294967294, %s636_s17   ;;  %s636_s17 = sphi %s671_s17, %s16_s17   ;;  %s632_s16 = sphi %s669_s16, %s881_s16   ;;  %s628_s15 = sphi %s667_s15, %s880_s15   ;;  %s624_s14 = sphi %s665_s14, %s879_s14   ;;  %s620_s13 = sphi %s663_s13, %s878_s13   ;;  %s616_s12 = sphi %s661_s12, %s877_s12  }
   0x5   : > { %s28_s20 = sadd.s32 1, %s632_s16  ;;  %s105_s21 = sadd.s32 1, %s624_s14 }
   0x6   : > { %p30_p0 = scmp.ge.s32.totalorder %s28_s20, 2  ;;  %p115_p1 = scmp.ne.s32.totalorder %s624_s14, %s620_s13 }
   0x7   : > { %p116_p2 = scmp.eq.s32.totalorder %s457_s18, 1  ;;  %p121_p3 = scmp.ne.s32.totalorder %s620_s13, %s616_s12 }
   0x8   : > { %s883_s20 = smov (%p30_p0, %s28_s20), 0  ;;  %p122_p5 = scmp.eq.s32.totalorder %s458_s19, 1 }
   0x9   : > { %p701_p4 = por %p116_p2, %p115_p1  ;;  %s102_s23 = ssub.s32 %s632_s16, %s883_s20 }
   0xa   : > { %p461_p6 = scmp.ge.s32.totalorder %s636_s17, 1  ;;  %p103_p7 = scmp.eq.s32.totalorder %s102_s23, 0 }
   0xb   : > { %p708_p8 = por %p122_p5, %p121_p3  ;;  %p160_p9 = scmp.lt.s32.totalorder %s636_s17, 3 }
   0xc   : > { %s714_s25 = scalar_select %p103_p7, %s624_s14, %s105_s21  }
   0xd   : > { %p161_p10 = pnand %p461_p6, %p160_p9 }
   0xe   : > { %p189_p11 = scmp.lt.s32.totalorder (!%p161_p10), %s628_s15, 1  ;;  %s186_s27 = sand.u32 (!%p161_p10), 1, %s620_s13  }
   0xf   : > { %164 = sbr.rel (%p161_p10) target bundleno = 274 (0x112), region = 32  ;;  %s464_s30 = sshll.u32 (!%p161_p10), %s628_s15, 4 }
  0x10   : > { %s187_s4 = scalar_lea.vmem (!%p161_p10), [#allocation3], %s186_s27  ;;  %s383_s8 = scalar_lea.hbm (!%p161_p10), %s872_s3, %s464_s30 }
  0x11   : > { %s385_s5 = sshll.u32 (!%p161_p10), %s187_s4, 4  ;;  %s640_s11 = smov (!%p161_p10), [#allocation3]   ;;  %s386_s5 = int_to_ptr.vmem [resolvable:$true] %s385_s5 }
  0x12   : > { %s560_s10 = scalar_lea.vmem (!%p161_p10), %s386_s5, 16  ;;  %s564_s18 = sshll.u32 (!%p161_p10), %s640_s11, 4  ;;  %s565_s18 = int_to_ptr.vmem [resolvable:$false] %s564_s18 }
  0x13   : > { %p561_p12 = scmp.ne.s32.totalorder (!%p161_p10), %s386_s5, %s560_s10  ;;  %p567_p1 = scmp.lt.s32.totalorder (!%p161_p10), %s386_s5, %s565_s18 }
  0x14   : > { %v287_v0 = vld [vmem:[%s870_s1 + $0xf8] sm:$0xff]  ;;  %v286_v2 = vld [vmem:[%s870_s1 + $0xf0] sm:$0xff]  ;;  %v203_v3 = vlaneseq  ;;  %v285_v5 = vld [vmem:[%s870_s1 + $0xe8] sm:$0xff]  ;;  %s190_s9 = scalar_select %p189_p11, %s628_s15, 1  ;;  %v638_v8 = vmov 0.0   ;;  %vm370_vm1 = vcmask 57344  }
  0x15   : > { %v271_v1 = vld [vmem:[%s870_s1 + $0x78] sm:$0xff]  ;;  %468 = vmatprep.subr.mxu0 %v287_v0  ;;  %v270_v4 = vld [vmem:[%s870_s1 + $0x70] sm:$0xff]  ;;  %v269_v7 = vld [vmem:[%s870_s1 + $0x68] sm:$0xff]  ;;  %v639_v32 = vmov 1966171168   ;;  %p562_p13 = pnand %p561_p12, %p701_p4  ;;  %s566_s15 = scalar_lea.vmem %s565_s18, 32 }
  0x16   : > { %469 = vmatpush3.msra.mxu0 %v271_v1  ;;  %vm734_vm0 = vcmp.lt.s32.totalorder %v203_v3, 256  ;;  %v284_v9 = vld [vmem:[%s870_s1 + $0xe0] sm:$0xff]  ;;  %s467_s21 = sshll.u32 %s190_s9, 5  ;;  %v283_v11 = vld [vmem:[%s870_s1 + $0xd8] sm:$0xff]  ;;  %v282_v13 = vld [vmem:[%s870_s1 + $0xd0] sm:$0xff]  ;;  %v231_v33 = vunpack.c.l.s4 %v639_v32  ;;  %v234_v43 = vshrl.u32 %v203_v3, 7  ;;  %p568_p2 = scmp.lt.s32.totalorder %s566_s15, %s560_s10 }
  0x17   : > { %470 = vmatprep.subr.mxu0 %v286_v2  ;;  %207 = vst.msk [vmem:[#allocation2] sm:$0x3] %vm734_vm0, %v638_v8  ;;  %v268_v10 = vld [vmem:[%s870_s1 + $0x60] sm:$0xff]  ;;  %v267_v12 = vld [vmem:[%s870_s1 + $0x58] sm:$0xff]  ;;  %s197_s6 = scalar_lea.vmem %s869_s0, %s467_s21  ;;  %v266_v14 = vld [vmem:[%s870_s1 + $0x50] sm:$0xff]  ;;  %s373_s9 = scalar_lea.sflag [#allocation4], %s186_s27 }
  0x18   : > { %471 = vmatpush3.msra.mxu0 %v270_v4  ;;  %v281_v15 = vld [vmem:[%s870_s1 + $0xc8] sm:$0xff]  ;;  %v208_v17 = vld [vmem:[%s197_s6] sm:$0xff]  ;;  %v210_v19 = vld [vmem:[%s197_s6 + $0x10] sm:$0xff]  ;;  %v232_v42 = vunpack.c.0.s8 %v231_v33  ;;  %v296_v63 = vsub.s32 1, %v234_v43  ;;  %v292_v0 = vsub.s32 0, %v234_v43  ;;  %p563_p0 = pneg %p562_p13  ;;  %p569_p3 = por %p568_p2, %p567_p1 }
  0x19   : > { %472 = vmatprep.subr.mxu0 %v285_v5  ;;  %v265_v16 = vld [vmem:[%s870_s1 + $0x48] sm:$0xff]  ;;  %v211_v20 = vld [vmem:[%s197_s6 + $0x18] sm:$0xff]  ;;  %v280_v21 = vld [vmem:[%s870_s1 + $0xc0] sm:$0xff]  ;;  %v213_v22 = vadd.f32 %v210_v19, %v208_v17 }
  0x1a   : > { %473 = vmatpush3.msra.mxu0 %v269_v7  ;;  %v209_v18 = vld [vmem:[%s197_s6 + $0x8] sm:$0xff]  ;;  %v264_v24 = vld [vmem:[%s870_s1 + $0x40] sm:$0xff]  ;;  %v279_v25 = vld [vmem:[%s870_s1 + $0xb8] sm:$0xff]  ;;  %v235_v52 = vsub.s32 %v232_v42, %v234_v43  ;;  %p570_p5 = pnand %p569_p3, %p563_p0 }
  0x1b   : > { %474 = vmatprep.subr.mxu0 %v284_v9  ;;  %v220_v23 = vadd.f32 %v211_v20, %v209_v18  ;;  %v214_v26 = vrot.slane %v213_v22, 4  ;;  %v263_v28 = vld [vmem:[%s870_s1 + $0x38] sm:$0xff]  ;;  %v278_v29 = vld [vmem:[%s870_s1 + $0xb0] sm:$0xff]  ;;  %v277_v35 = vld [vmem:[%s870_s1 + $0xa8] sm:$0xff] }
  0x1c   : > { %475 = vmatpush3.msra.mxu0 %v268_v10  ;;  %v262_v34 = vld [vmem:[%s870_s1 + $0x30] sm:$0xff]  ;;  %v261_v38 = vld [vmem:[%s870_s1 + $0x28] sm:$0xff]  ;;  %v276_v39 = vld [vmem:[%s870_s1 + $0xa0] sm:$0xff] }
  0x1d   : > { %476 = vmatprep.subr.mxu0 %v283_v11  ;;  %v221_v27 = vrot.slane %v220_v23, 4  ;;  %v215_v30 = vadd.f32 %v214_v26, %v213_v22  ;;  %v260_v44 = vld [vmem:[%s870_s1 + $0x20] sm:$0xff]  ;;  %v275_v45 = vld [vmem:[%s870_s1 + $0x98] sm:$0xff]  ;;  %v274_v49 = vld [vmem:[%s870_s1 + $0x90] sm:$0xff] }
  0x1e   : > { %477 = vmatpush3.msra.mxu0 %v267_v12  ;;  %v259_v48 = vld [vmem:[%s870_s1 + $0x18] sm:$0xff]  ;;  %v258_v53 = vld [vmem:[%s870_s1 + $0x10] sm:$0xff]  ;;  %v273_v54 = vld [vmem:[%s870_s1 + $0x88] sm:$0xff] }
  0x1f   : > { %478 = vmatprep.subr.mxu0 %v282_v13  ;;  %v222_v31 = vadd.f32 %v221_v27, %v220_v23  ;;  %v216_v36 = vrot.slane %v215_v30, 2  ;;  %v257_v56 = vld [vmem:[%s870_s1 + $0x8] sm:$0xff]  ;;  %v272_v57 = vld [vmem:[%s870_s1 + $0x80] sm:$0xff] }
  0x20   : > { %479 = vmatpush3.msra.mxu0 %v266_v14  ;;  %v256_v59 = vld [vmem:[%s870_s1] sm:$0xff] }
  0x21   : > { %480 = vmatprep.subr.mxu0 %v281_v15  ;;  %v223_v37 = vrot.slane %v222_v31, 2  ;;  %v217_v40 = vadd.f32 %v216_v36, %v215_v30  ;;  %v212_v60 = vld [vmem:[#allocation2] sm:$0x3] }
  0x22   : > { %481 = vmatpush3.msra.mxu0 %v265_v16  ;;  %v288_v7 = vld [vmem:[%s871_s2] sm:$0x1] }
  0x23   : > { %482 = vmatprep.subr.mxu0 %v280_v21  ;;  %v224_v41 = vadd.f32 %v223_v37, %v222_v31  ;;  %v218_v46 = vrot.slane %v217_v40, 1 }
  0x24   : > { %483 = vmatpush3.msra.mxu0 %v264_v24 }
  0x25   : > { %484 = vmatprep.subr.mxu0 %v279_v25  ;;  %v225_v47 = vrot.slane %v224_v41, 1  ;;  %v219_v50 = vadd.f32 %v218_v46, %v217_v40 }
  0x26   : > { %485 = vmatpush3.msra.mxu0 %v263_v28 }
  0x27   : > { %486 = vmatprep.subr.mxu0 %v278_v29  ;;  %v226_v51 = vadd.f32 %v225_v47, %v224_v41 }
  0x28   : > { %487 = vmatpush3.msra.mxu0 %v262_v34 }
  0x29   : > { %488 = vmatprep.subr.mxu0 %v277_v35  ;;  %v229_v55 = vcombine.low %v219_v50, %v226_v51 }
  0x2a   : > { %489 = vmatpush3.msra.mxu0 %v261_v38 }
  0x2b   : > { %490 = vmatprep.subr.mxu0 %v276_v39  ;;  %v236_v58 = vrot.slane %v229_v55, %v235_v52 }
  0x2c   : > { %491 = vmatpush3.msra.mxu0 %v260_v44 }
  0x2d   : > { %492 = vmatprep.subr.mxu0 %v275_v45  ;;  %v243_v61 = vrot.slane %v236_v58, %v235_v52 }
  0x2e   : > { %493 = vmatpush3.msra.mxu0 %v259_v48 }
  0x2f   : > { %494 = vmatprep.subr.mxu0 %v274_v49  ;;  %v245_v62 = vadd.f32 %v243_v61, %v212_v60 }
  0x30   : > { %495 = vmatpush3.msra.mxu0 %v258_v53 }
  0x31   : > { %496 = vmatprep.subr.mxu0 %v273_v54  ;;  %250 = vst.msk [vmem:[#allocation2] sm:$0x3] %vm734_vm0, %v245_v62 }
  0x32   : > { %497 = vmatpush3.msra.mxu0 %v257_v56 }
  0x33   : > { %498 = vmatprep.subr.mxu0 %v272_v57 }
  0x34   : > { %499 = vmatpush3.msra.mxu0 %v256_v59 }
  0x38   : > { %v254_v1 = vld [vmem:[#allocation2] sm:$0x3] }
  0x39   : > { %v255_v2 = vmul.f32 0.0625, %v254_v1 }
  0x3b   : > { %v297_v3 = vrot.slane %v255_v2, %v296_v63  ;;  %v293_v4 = vrot.slane %v255_v2, %v292_v0 }
  0x3d   : > { %364 = vmatprep.mubr.f32.mxu0 %v297_v3 }
  0x3e   : > { %365 = vmatmul.mubr.f32.vlgmr.msra.gmra.mxu0 %v293_v4 }
  0xfe   : > { %v500_v5 = vpop.f32.mrf.mxu0 }
 0x100   : > { %v501_v8 = vpop.f32.mrf.mxu0 }
 0x101   : > { %v502_v6 = vadd.f32 %v501_v8, %v500_v5 }
 0x103   : > { %v367_v9 = vadd.f32 %v502_v6, %v288_v7 }
 0x105   : > { %371 = vst.msk [vmem:[%s187_s4] sm:$0x1] %vm370_vm1, %v367_v9 }
 0x106   : > { %573 = shalt.err (!%p570_p5)
}
 0x107   : > { %s574_s19 = scalar_lea.hbm %s383_s8, 16  ;;  %s578_s26 = scalar_lea.hbm %s872_s3, 32 }
 0x108   : > { %p575_p6 = scmp.ne.s32.totalorder %s383_s8, %s574_s19  ;;  %p579_p10 = scmp.lt.s32.totalorder %s383_s8, %s872_s3 }
 0x109   : > { %p580_p11 = scmp.lt.s32.totalorder %s578_s26, %s574_s19 }
 0x10a   : > { %p576_p7 = pnand %p575_p6, %p701_p4 }
 0x10b   : > { %p581_p12 = por %p580_p11, %p579_p10 }
 0x10c   : > { %p577_p9 = pneg %p576_p7 }
 0x10e   : > { %p582_p13 = pnand %p581_p12, %p577_p9 }
 0x110   : > { %585 = shalt.err (!%p582_p13)
}
 0x111   : > { %503 = dma.vmem_to_hbm [thread:$0]  (%p701_p4), %s386_s5, 16, %s383_s8, %s373_s9  }
 0x112 PF: > { %p509_p0 = scmp.ge.s32.totalorder %s636_s17, 2  ;;  %s397_s29 = sand.u32 1, %s616_s12  }
 0x113   : > { %s398_s30 = scalar_lea.sflag [#allocation4], %s397_s29 }
 0x114   : > { %p506_p1 = pnand %p509_p0, %p708_p8 }
 0x116   : > { %p507_p2 = pneg %p506_p1 }
 0x118   : > { %611 = dma.done.wait (%p507_p2), %s398_s30, 16  }
 0x119   : > { %613 = vsyncadd (%p507_p2), %s398_s30, 4294967280  ;;  %s16_s17 = sadd.s32 1, %s636_s17   ;;  %s877_s12 = smov %s620_s13 }
 0x11a   : > { %p13_p3 = scmp.ge.s32.totalorder %s16_s17, 4   ;;  %s878_s13 = smov %s624_s14 }
 0x11b   : > { %s879_s14 = smov %s714_s25  ;;  %s880_s15 = smov %s632_s16 }
 0x11c   : > { %s881_s16 = smov %s883_s20  ;;  %15 = sbr.rel (!%p13_p3) target bundleno = 4 (0x4), region = 75 }
 0x121   :  { %402 = vsyncpa [#allocation4], 1 }
 0x122   :  { %404 = vsyncpa [#allocation4 + $0x1], 1 }

</bundles_post_ra>
